<compile_context>
chip_gen: v5e
topology: v5e:2x2
jax: 0.10.0
libtpu: 0.0.40
codegen_flags: <defaults>
</compile_context>

<pallas_src>
import functools

import jax
import jax.numpy as jnp
from jax import lax
from jax.experimental import pallas as pl
from jax.experimental.pallas import tpu as pltpu


def _round_up(x, k):
    return (x + k - 1) // k * k


def _gram_kernel(matB_ref, w_ref, gram_ref, *, n_rows_total, block_rows,
                 blocks_per_core, needs_mask):
    c = pl.program_id(0)          # core-split index ("parallel" axis)
    k = pl.program_id(1)          # reduction step within this core ("arbitrary")

    # One well-shaped MXU matmul for the whole block:
    #   T[i, j] = sum_p flatB[i, p] * W[p, j] == (B_i @ vecY)[j]
    block = matB_ref[...]                                        # (block_rows, m*n)
    T = jnp.dot(block, w_ref[...],
                preferred_element_type=jnp.float32)              # (block_rows, m) f32

    if needs_mask:
        # Zero rows past the true N: the partial tail block and/or blocks that
        # are redundant because num_blocks does not split evenly across cores.
        # (select fully replaces garbage lanes, so OOB junk never reaches Gram.)
        row0 = (c * blocks_per_core + k) * block_rows
        row_ids = row0 + lax.broadcasted_iota(jnp.int32, (block_rows, 1), 0)
        T = jnp.where(row_ids < n_rows_total, T, 0.0)

    # Single Gram update per block, contraction length block_rows.
    partial = lax.dot_general(
        T, T, dimension_numbers=(((0,), (0,)), ((), ())),
        preferred_element_type=jnp.float32)                      # (m, m)

    @pl.when(k == 0)
    def _():
        gram_ref[...] = jnp.zeros_like(gram_ref)

    gram_ref[...] += partial


def detect_orthogonal_rank_one_eigen_forward(
        matB, theta0, *, block_rows=None, num_core_splits=2,
        vmem_slab_budget_bytes=4 * 1024 * 1024, stream_dtype=jnp.float32):
    """Pallas implementation of DetectOrthogonalRankOneEigenModel.forward().

    matB: (N, m, n) real, theta0: (n,) real.  Returns scalar loss (float32).
    """
    N, m, n = matB.shape
    itemsize = jnp.dtype(stream_dtype).itemsize

    # Lane-dense layout: (N, m, n) -> (N, m*n).  Row-major reshape -> no copy.
    flatB = matB.reshape(N, m * n).astype(stream_dtype)

    # Hoisted out of the kernel: theta normalization and the contraction matrix
    # W = kron(I_m, vecY) of shape (m*n, m), so that flatB @ W == matB @ vecY.
    theta = jnp.asarray(theta0, jnp.float32)
    vecY = theta / jnp.linalg.norm(theta)   # NOTE: theta0 ~ 0 -> NaN, same as reference
    W = jnp.kron(jnp.eye(m, dtype=jnp.float32), vecY[:, None]).astype(stream_dtype)

    # Padded-aware VMEM sizing ((8,128) tiles, double-buffered input slab).
    bytes_per_row = _round_up(m * n, 128) * itemsize
    if block_rows is None:
        block_rows = max(8, (vmem_slab_budget_bytes // bytes_per_row) // 8 * 8)
    block_rows = int(min(block_rows, N))
    if block_rows < N:
        block_rows = max(8, block_rows // 8 * 8)        # (8,128) sublane rule

    num_blocks = pl.cdiv(N, block_rows)
    splits = int(max(1, min(num_core_splits, num_blocks)))
    blocks_per_core = pl.cdiv(num_blocks, splits)
    needs_mask = (splits * blocks_per_core * block_rows != N)
    last_block = num_blocks - 1

    vmem_est = (2 * _round_up(block_rows, 8) * _round_up(m * n, 128) * itemsize  # input
                + 2 * _round_up(m * n, 8) * _round_up(m, 128) * itemsize         # W
                + splits * _round_up(m, 8) * _round_up(m, 128) * 4)              # out
    vmem_limit = int(min(max(2 * vmem_est, 16 * 1024 * 1024), 48 * 1024 * 1024))

    kernel = functools.partial(
        _gram_kernel, n_rows_total=N, block_rows=block_rows,
        blocks_per_core=blocks_per_core, needs_mask=needs_mask)

    def matB_index_map(c, k):
        b = c * blocks_per_core + k
        # Clamp redundant trailing blocks (their contribution is masked to zero),
        # so the DMA never indexes past the last (possibly partial) block.
        return (jnp.minimum(b, last_block), 0)

    partial_grams = pl.pallas_call(
        kernel,
        out_shape=jax.ShapeDtypeStruct((splits, m, m), jnp.float32),
        grid_spec=pltpu.PrefetchScalarGridSpec(
            num_scalar_prefetch=0,
            grid=(splits, blocks_per_core),
            in_specs=[
                # lane-dense slab of block_rows matrices per step
                pl.BlockSpec((block_rows, m * n), matB_index_map),
                # W: same full block every step
                pl.BlockSpec((m * n, m), lambda c, k: (0, 0)),
            ],
            # per-core partial Gram, revisited across the reduction axis
            out_specs=pl.BlockSpec((None, m, m), lambda c, k: (c, 0, 0)),
        ),
        compiler_params=pltpu.CompilerParams(
            dimension_semantics=("parallel", "arbitrary"),
            vmem_limit_bytes=vmem_limit),
    )(flatB, W)

    gram = jnp.sum(partial_grams, axis=0)                        # (m, m)

    # TODO(synk): eigvalsh has no clean Pallas TPU equivalent; the smallest
    # eigenvalue of the small (m, m) Gram matrix is computed with XLA here.
    loss = jnp.linalg.eigvalsh(gram)[0]
    return loss


def _reference(matB, theta0):
    vecY = theta0 / jnp.linalg.norm(theta0)
    tmp1 = matB @ vecY                         # (N, m)
    return jnp.linalg.eigvalsh(tmp1.T @ tmp1)[0]


if __name__ == "__main__":
    key = jax.random.PRNGKey(0)
    k1, k2, k3 = jax.random.split(key, 3)

    # matB: stack of N real matrices of shape (m, n); theta0: parameter of shape (n,)
    N, m, n = 6, 8, 32
    matB = jax.random.normal(k1, (N, m, n), dtype=jnp.float32)
    theta0 = jax.random.normal(k2, (n,), dtype=jnp.float32)

    loss = jax.block_until_ready(
        detect_orthogonal_rank_one_eigen_forward(matB, theta0))
    ref = _reference(matB, theta0)
    assert jnp.allclose(loss, ref, atol=1e-3, rtol=1e-3), (loss, ref)

    # Second configuration exercising multi-block streaming, the in-kernel tail
    # mask (37 % 8 != 0) and the 2-way core split (redundant clamped block).
    N2 = 37
    matB2 = jax.random.normal(k3, (N2, m, n), dtype=jnp.float32)
    loss2 = jax.block_until_ready(
        detect_orthogonal_rank_one_eigen_forward(
            matB2, theta0, block_rows=8, num_core_splits=2))
    ref2 = _reference(matB2, theta0)
    assert jnp.allclose(loss2, ref2, atol=1e-3, rtol=1e-3), (loss2, ref2)

    print("KERNEL_OK")
</pallas_src>

<mosaic_0001>
module attributes {stable_mosaic.version = 11 : i64} {
  func.func @_gram_kernel(%arg0: i32, %arg1: i32, %arg2: memref<6x256xf32, #tpu.memory_space<vmem>>, %arg3: memref<256x8xf32, #tpu.memory_space<vmem>>, %arg4: memref<1x8x8xf32, #tpu.memory_space<vmem>>) attributes {dimension_semantics = [#tpu.dimension_semantics<parallel>, #tpu.dimension_semantics<arbitrary>], iteration_bounds = array<i64: 1, 1>, scalar_prefetch = 0 : i64, scratch_operands = 0 : i64, tpu.core_type = #tpu.core_type<tc>, window_params = [{transform_indices = @transform_0, window_bounds = array<i64: 6, 256>}, {pipeline_mode = #tpu.pipeline_mode<synchronous>, transform_indices = @transform_1, window_bounds = array<i64: 256, 8>}, {transform_indices = @transform_2, window_bounds = array<i64: 1, 8, 8>}]} {
    %c0 = arith.constant 0 : index
    %c0_0 = arith.constant 0 : index
    %0 = vector.load %arg2[%c0, %c0_0] : memref<6x256xf32, #tpu.memory_space<vmem>>, vector<6x256xf32>
    %c0_1 = arith.constant 0 : index
    %c0_2 = arith.constant 0 : index
    %1 = vector.load %arg3[%c0_1, %c0_2] : memref<256x8xf32, #tpu.memory_space<vmem>>, vector<256x8xf32>
    %cst = arith.constant dense<0.000000e+00> : vector<6x8xf32>
    %2 = tpu.matmul %0, %1, %cst {dimension_numbers = #tpu.dot_dimension_numbers<[1], [0], [0], [1], [0, 0, 1, 1], [], []>} : vector<6x256xf32>, vector<256x8xf32>, vector<6x8xf32> -> vector<6x8xf32>
    %cst_3 = arith.constant dense<0.000000e+00> : vector<8x8xf32>
    %3 = tpu.matmul %2, %2, %cst_3 {dimension_numbers = #tpu.dot_dimension_numbers<[0], [0], [1], [1], [0, 1, 1, 1], [], []>} : vector<6x8xf32>, vector<6x8xf32>, vector<8x8xf32> -> vector<8x8xf32>
    %c0_i32 = arith.constant 0 : i32
    %4 = arith.cmpi eq, %arg1, %c0_i32 : i32
    %5 = arith.extui %4 : i1 to i32
    %c0_i32_4 = arith.constant 0 : i32
    %6 = arith.cmpi ne, %5, %c0_i32_4 : i32
    scf.if %6 {
      %cst_11 = arith.constant 0.000000e+00 : f32
      %13 = vector.broadcast %cst_11 : f32 to vector<8x8xf32>
      %c0_12 = arith.constant 0 : index
      %c0_13 = arith.constant 0 : index
      %c0_14 = arith.constant 0 : index
      %14 = vector.load %arg4[%c0_12, %c0_13, %c0_14] : memref<1x8x8xf32, #tpu.memory_space<vmem>>, vector<1x8x8xf32>
      %15 = vector.shape_cast %14 : vector<1x8x8xf32> to vector<8x8xf32>
      %16 = vector.shape_cast %13 : vector<8x8xf32> to vector<1x8x8xf32>
      tpu.vector_store %arg4[%c0_12, %c0_13, %c0_14], %16 {strides = array<i32>} : memref<1x8x8xf32, #tpu.memory_space<vmem>>, vector<1x8x8xf32>,
    } else {
    }
    %c0_5 = arith.constant 0 : index
    %c0_6 = arith.constant 0 : index
    %c0_7 = arith.constant 0 : index
    %7 = vector.load %arg4[%c0_5, %c0_6, %c0_7] : memref<1x8x8xf32, #tpu.memory_space<vmem>>, vector<1x8x8xf32>
    %8 = vector.shape_cast %7 : vector<1x8x8xf32> to vector<8x8xf32>
    %9 = arith.addf %8, %3 : vector<8x8xf32>
    %c0_8 = arith.constant 0 : index
    %c0_9 = arith.constant 0 : index
    %c0_10 = arith.constant 0 : index
    %10 = vector.load %arg4[%c0_8, %c0_9, %c0_10] : memref<1x8x8xf32, #tpu.memory_space<vmem>>, vector<1x8x8xf32>
    %11 = vector.shape_cast %10 : vector<1x8x8xf32> to vector<8x8xf32>
    %12 = vector.shape_cast %9 : vector<8x8xf32> to vector<1x8x8xf32>
    tpu.vector_store %arg4[%c0_8, %c0_9, %c0_10], %12 {strides = array<i32>} : memref<1x8x8xf32, #tpu.memory_space<vmem>>, vector<1x8x8xf32>,
    return
  }
  func.func @transform_0(%arg0: i32, %arg1: i32) -> (i32, i32) {
    %c1_i32 = arith.constant 1 : i32
    %0 = arith.muli %arg0, %c1_i32 : i32
    %1 = arith.addi %0, %arg1 : i32
    %c0_i32 = arith.constant 0 : i32
    %2 = arith.minsi %1, %c0_i32 : i32
    %c0_i32_0 = arith.constant 0 : i32
    %c0_i32_1 = arith.constant 0 : i32
    return %2, %c0_i32_0 : i32, i32
  }
  func.func @transform_1(%arg0: i32, %arg1: i32) -> (i32, i32) {
    %c0_i32 = arith.constant 0 : i32
    %c0_i32_0 = arith.constant 0 : i32
    %c0_i32_1 = arith.constant 0 : i32
    return %c0_i32, %c0_i32_0 : i32, i32
  }
  func.func @transform_2(%arg0: i32, %arg1: i32) -> (i32, i32, i32) {
    %c0_i32 = arith.constant 0 : i32
    %c0_i32_0 = arith.constant 0 : i32
    %c0_i32_1 = arith.constant 0 : i32
    return %arg0, %c0_i32, %c0_i32_0 : i32, i32, i32
  }
}

</mosaic_0001>

<bundles_post_ra>
// kernel: tpu_custom_call.1
= control target key start
LH: loop header
LB: loop body
LE: loop exit
PB: predicated region body
PF: predicated region fallthrough
CT: control target
= control target key end

     0   :  { %s360_s0 = inlined_call_operand.vmem [shape: f32[6,256], index: 0, kind: input, shape index: {}]   ;;  %s361_s1 = inlined_call_operand.vmem [shape: f32[256,8], index: 1, kind: input, shape index: {}]   ;;  %s362_s2 = inlined_call_operand.hbm [shape: f32[1,8,8], index: 2, kind: output, shape index: {}]  }
   0x1   :  { %v59_v0 = vld [vmem:[%s361_s1 + $0x78] sm:$0xff]  ;;  %v58_v2 = vld [vmem:[%s361_s1 + $0x70] sm:$0xff]  ;;  %v57_v4 = vld [vmem:[%s361_s1 + $0x68] sm:$0xff] }
   0x2   :  { %v75_v1 = vld [vmem:[%s361_s1 + $0xf8] sm:$0xff]  ;;  %76 = vmatpush.msra.mxu0 %v59_v0  ;;  %v74_v3 = vld [vmem:[%s361_s1 + $0xf0] sm:$0xff]  ;;  %v73_v5 = vld [vmem:[%s361_s1 + $0xe8] sm:$0xff] }
   0x3   :  { %96 = vmatpush.msra.mxu1 %v75_v1  ;;  %v56_v6 = vld [vmem:[%s361_s1 + $0x60] sm:$0xff]  ;;  %v55_v8 = vld [vmem:[%s361_s1 + $0x58] sm:$0xff]  ;;  %v54_v10 = vld [vmem:[%s361_s1 + $0x50] sm:$0xff] }
   0x4   :  { %77 = vmatpush.msra.mxu0 %v58_v2  ;;  %v72_v7 = vld [vmem:[%s361_s1 + $0xe0] sm:$0xff]  ;;  %v71_v9 = vld [vmem:[%s361_s1 + $0xd8] sm:$0xff]  ;;  %v70_v11 = vld [vmem:[%s361_s1 + $0xd0] sm:$0xff] }
   0x5   :  { %97 = vmatpush.msra.mxu1 %v74_v3  ;;  %v53_v12 = vld [vmem:[%s361_s1 + $0x48] sm:$0xff] }
   0x6   :  { %78 = vmatpush.msra.mxu0 %v57_v4  ;;  %v69_v13 = vld [vmem:[%s361_s1 + $0xc8] sm:$0xff] }
   0x7   :  { %98 = vmatpush.msra.mxu1 %v73_v5 }
   0x8   :  { %79 = vmatpush.msra.mxu0 %v56_v6 }
   0x9   :  { %99 = vmatpush.msra.mxu1 %v72_v7 }
   0xa   :  { %80 = vmatpush.msra.mxu0 %v55_v8 }
   0xb   :  { %100 = vmatpush.msra.mxu1 %v71_v9 }
   0xc   :  { %81 = vmatpush.msra.mxu0 %v54_v10 }
   0xd   :  { %101 = vmatpush.msra.mxu1 %v70_v11 }
   0xe   :  { %7 = vsyncpa [#allocation3], 0  ;;  %v52_v14 = vld [vmem:[%s361_s1 + $0x40] sm:$0xff]  ;;  %82 = vmatpush.msra.mxu0 %v53_v12  ;;  %v51_v16 = vld [vmem:[%s361_s1 + $0x38] sm:$0xff]  ;;  %vm152_vm0 = vcmask 1045504   ;;  %vm148_vm1 = vcmask 48128  }
   0xf   :  { %v68_v15 = vld [vmem:[%s361_s1 + $0xc0] sm:$0xff]  ;;  %102 = vmatpush.msra.mxu1 %v69_v13  ;;  %v67_v17 = vld [vmem:[%s361_s1 + $0xb8] sm:$0xff]  ;;  %v50_v18 = vld [vmem:[%s361_s1 + $0x30] sm:$0xff]  ;;  %vm180_vm2 = vcmask 64512   ;;  %v238_v38 = vmov 0.0   ;;  %s193_s23 = sshll.u32 %s362_s2, 4  ;;  %s194_s23 = int_to_ptr.hbm [resolvable:$true] %s193_s23 }
  0x10   :  { %83 = vmatpush.msra.mxu0 %v52_v14  ;;  %v66_v19 = vld [vmem:[%s361_s1 + $0xb0] sm:$0xff]  ;;  %v49_v20 = vld [vmem:[%s361_s1 + $0x28] sm:$0xff]  ;;  %v48_v22 = vld [vmem:[%s361_s1 + $0x20] sm:$0xff]  ;;  %181 = vst.msk [vmem:[#allocation2] sm:$0xff] %vm180_vm2, %v238_v38 }
  0x11   :  { %103 = vmatpush.msra.mxu1 %v68_v15  ;;  %v65_v21 = vld [vmem:[%s361_s1 + $0xa8] sm:$0xff]  ;;  %v64_v23 = vld [vmem:[%s361_s1 + $0xa0] sm:$0xff]  ;;  %v47_v24 = vld [vmem:[%s361_s1 + $0x18] sm:$0xff] }
  0x12   :  { %84 = vmatpush.msra.mxu0 %v51_v16  ;;  %v63_v25 = vld [vmem:[%s361_s1 + $0x98] sm:$0xff]  ;;  %v46_v26 = vld [vmem:[%s361_s1 + $0x10] sm:$0xff]  ;;  %v45_v28 = vld [vmem:[%s361_s1 + $0x8] sm:$0xff] }
  0x13   :  { %104 = vmatpush.msra.mxu1 %v67_v17  ;;  %v62_v27 = vld [vmem:[%s361_s1 + $0x90] sm:$0xff]  ;;  %v61_v29 = vld [vmem:[%s361_s1 + $0x88] sm:$0xff]  ;;  %v44_v30 = vld [vmem:[%s361_s1] sm:$0xff] }
  0x14   :  { %85 = vmatpush.msra.mxu0 %v50_v18  ;;  %v60_v31 = vld [vmem:[%s361_s1 + $0x80] sm:$0xff]  ;;  %v43_v33 = vld [vmem:[%s360_s0 + $0x8] sm:$0x3f]  ;;  %s239_s1 = smov [#allocation2]  }
  0x15   :  { %105 = vmatpush.msra.mxu1 %v66_v19  ;;  %v42_v32 = vld [vmem:[%s360_s0] sm:$0x3f]  ;;  %s191_s21 = sshll.u32 %s239_s1, 4  ;;  %s192_s21 = int_to_ptr.vmem [resolvable:$true] %s191_s21 }
  0x16   :  { %86 = vmatpush.msra.mxu0 %v49_v20 }
  0x17   :  { %106 = vmatpush.msra.mxu1 %v65_v21  ;;  %v182_v39 = vld [vmem:[#allocation2] sm:$0xff] }
  0x18   :  { %87 = vmatpush.msra.mxu0 %v48_v22 }
  0x19   :  { %107 = vmatpush.msra.mxu1 %v64_v23 }
  0x1a   :  { %88 = vmatpush.msra.mxu0 %v47_v24 }
  0x1b   :  { %108 = vmatpush.msra.mxu1 %v63_v25 }
  0x1c   :  { %89 = vmatpush.msra.mxu0 %v46_v26 }
  0x1d   :  { %109 = vmatpush.msra.mxu1 %v62_v27 }
  0x1e   :  { %90 = vmatpush.msra.mxu0 %v45_v28 }
  0x1f   :  { %110 = vmatpush.msra.mxu1 %v61_v29 }
  0x20   :  { %91 = vmatpush.msra.mxu0 %v44_v30 }
  0x21   :  { %111 = vmatpush.msra.mxu1 %v60_v31  ;;  %92 = vmatmul.f32.vlgmr.msra.gmra.mxu0 %v42_v32 }
  0x22   :  { %112 = vmatmul.f32.vlgmr.msra.gmra.mxu1 %v43_v33 }
  0x9e   :  { %v93_v34 = vpop.f32.mrf.mxu0 }
  0x9f   :  { %v113_v35 = vpop.f32.mrf.mxu1 }
  0xa0   :  { %v114_v36 = vadd.f32 %v113_v35, %v93_v34 }
  0xa2   :  { %116 = vxpose.xlu0.b32.start.end [1/1] (short) (narrow) %v114_v36, 8  ;;  %208 = vmatpush.msk.msra.mxu2 %vm152_vm0, %v114_v36 }
 0x146   :  { %v132_v37 = vpop.trf.xlu0 }
 0x147   :  { %209 = vmatmul.msk.f32.vlgmr.msra.gmra.mxu2 %vm148_vm1, %v132_v37 }
 0x1ca   :  { %v173_v40 = vpop.f32.mrf.mxu2 }
 0x1cb   :  { %v183_v41 = vadd.f32 %v182_v39, %v173_v40 }
 0x1cd   :  { %185 = vst.msk [vmem:[#allocation2] sm:$0xff] %vm180_vm2, %v183_v41 }
 0x1ce   :  { %196 = dma.vmem_to_hbm [thread:$0]  %s192_s21, 128, %s194_s23, [#allocation3]  }
 0x1cf   :  { %236 = dma.done.wait [#allocation3], 128  }
 0x1d0   :  { %237 = vsyncadd [#allocation3], 4294967168 }
 0x1d1   :  { %201 = vsyncpa [#allocation3], 1 }

</bundles_post_ra>
